<compile_context>
chip_gen: v7x
topology: tpu7x:2x2x1
jax: 0.10.0
libtpu: 0.0.40
codegen_flags: <defaults>
</compile_context>

<pallas_src>
import functools

import jax
import jax.numpy as jnp
from jax.experimental import pallas as pl
from jax.experimental.pallas import tpu as pltpu

HIDDEN = 64  # true hidden size of the module (no padding)


def _round_up(x, m):
    return (x + m - 1) // m * m


def _vmem_budget_bytes():
    """Per-generation VMEM budget for Pallas-managed buffers (leave headroom)."""
    try:
        cap = int(pltpu.get_tpu_info().vmem_capacity_bytes)
    except Exception:
        cap = 64 << 20  # conservative fallback = v7x per-TensorCore VMEM
    return int(min(cap * 3 // 4, 100 << 20))  # ~48 MiB on v7x, ~96 MiB on v5e/v6e


def _pick_tile_b(B, F, x_itemsize, requested=None):
    """Largest batch tile (multiple of 128) that fits the VMEM budget."""
    budget = _vmem_budget_bytes()
    fixed = F * HIDDEN * x_itemsize        # resident W1 (single-buffered)
    fixed += 2 * HIDDEN * 4                # b1, W2 rows
    fixed += 2 << 20                       # margin for compiler-internal scratch
    per_row = 2 * F * x_itemsize           # double-buffered x tile
    per_row += 2 * 128 * 4                 # double-buffered (tile_b, 1) out block (lane-padded)
    per_row += 3 * 128 * 4                 # hidden activations + elementwise temporaries
    tile_b = max(128, ((budget - fixed) // per_row // 128) * 128)
    tile_b = min(tile_b, 8192)             # per-step overhead (~0.35us) already amortized
    if requested is not None:
        tile_b = min(tile_b, max(128, _round_up(int(requested), 128)))
    # Guarantee >=2 (ideally >=4) grid steps when B allows -> v7x dual-TC sharding.
    if B >= 4 * 128:
        tile_b = min(tile_b, _round_up(pl.cdiv(B, 4), 128))
    elif B >= 2 * 128:
        tile_b = min(tile_b, _round_up(pl.cdiv(B, 2), 128))
    return min(tile_b, _round_up(B, 128))


def mlp_kernel(x_ref, w1_ref, b1_ref, w2_ref, b2_ref, o_ref):
    """One batch tile of sigmoid(relu(x @ W1 + b1) @ W2 + b2).

    x_ref : (TILE_B, F)    streamed activation tile (f32 or bf16)
    w1_ref: (F, 64)        layer-1 weight, (in, out) layout (resident in VMEM)
    b1_ref: (1, 64)        layer-1 bias row (f32, resident)
    w2_ref: (1, 64)        layer-2 weight row (f32, resident)
    b2_ref: (1,)  SMEM     layer-2 bias scalar
    o_ref : (TILE_B, 1)    output column (f32)
    """
    # Layer 1 on the MXU in natural orientation: no transpose of the x tile.
    h = jnp.dot(x_ref[...], w1_ref[...], preferred_element_type=jnp.float32)
    h = jnp.maximum(h + b1_ref[...], 0.0)              # bias + ReLU (VPU, f32)

    # Layer 2 (output width 1): skip the MXU — VPU multiply + XLU lane-reduce.
    y = jnp.sum(h * w2_ref[...], axis=1, keepdims=True) + b2_ref[0]

    # Sigmoid via exp (EUP) — exact, f32 (safe on v5e which lacks bf16 VPU/EUP).
    o_ref[...] = (1.0 / (1.0 + jnp.exp(-y))).astype(o_ref.dtype)


@functools.partial(jax.jit, static_argnames=("tile_b", "single_buffer_weights"))
def _forward_impl(x, w1, b1, w2, b2, *, tile_b, single_buffer_weights):
    B, F = x.shape
    dtype = x.dtype

    # Weight prep (all tiny): W1 stays (in, out) = (F, 64); biases/W2 as rows.
    w1_c = w1.astype(dtype)                                   # (F, 64)
    b1_c = b1.reshape(1, HIDDEN).astype(jnp.float32)          # (1, 64)
    w2_c = w2.reshape(1, HIDDEN).astype(jnp.float32)          # (1, 64)
    b2_c = b2.reshape(1).astype(jnp.float32)                  # (1,) -> SMEM

    num_tiles = pl.cdiv(B, tile_b)   # ragged tail handled by Pallas (no jnp.pad HBM pass)

    kw = {"pipeline_mode": pl.Buffered(1)} if single_buffer_weights else {}
    in_specs = [
        pl.BlockSpec((tile_b, F), lambda i: (i, 0)),          # streamed x tile
        pl.BlockSpec((F, HIDDEN), lambda i: (0, 0), **kw),    # W1 (resident)
        pl.BlockSpec((1, HIDDEN), lambda i: (0, 0), **kw),    # b1 (resident)
        pl.BlockSpec((1, HIDDEN), lambda i: (0, 0), **kw),    # W2 (resident)
        pl.BlockSpec(memory_space=pltpu.MemorySpace.SMEM),    # b2 scalar
    ]
    out_specs = pl.BlockSpec((tile_b, 1), lambda i: (i, 0))

    # Explicit VMEM budget for this tiling (tile_b was chosen to fit it).
    x_tile_bytes = tile_b * F * dtype.itemsize
    out_tile_bytes = tile_b * 128 * 4                 # (tile_b, 1) lane-padded block
    h_bytes = tile_b * 128 * 4                        # hidden activations (64 lanes, padded)
    w_vmem = F * HIDDEN * dtype.itemsize * (1 if single_buffer_weights else 2)
    needed = 2 * x_tile_bytes + 2 * out_tile_bytes + 3 * h_bytes + w_vmem + (4 << 20)
    vmem_limit = int(min(max(needed, 16 << 20), 112 << 20))

    cost = pl.CostEstimate(
        flops=2 * B * F * HIDDEN + 3 * B * HIDDEN,
        transcendentals=B,
        bytes_accessed=B * F * dtype.itemsize + B * 4
        + F * HIDDEN * dtype.itemsize + 2 * HIDDEN * 4 + 4,
    )

    return pl.pallas_call(
        mlp_kernel,
        out_shape=jax.ShapeDtypeStruct((B, 1), jnp.float32),
        grid_spec=pltpu.PrefetchScalarGridSpec(
            num_scalar_prefetch=0,
            grid=(num_tiles,),
            in_specs=in_specs,
            out_specs=out_specs,
        ),
        compiler_params=pltpu.CompilerParams(
            dimension_semantics=("parallel",),       # dual-TC sharding on v7x
            vmem_limit_bytes=vmem_limit,
        ),
        cost_estimate=cost,
    )(x, w1_c, b1_c, w2_c, b2_c)


_SINGLE_BUFFER_OK = None  # cached: does this JAX build accept pl.Buffered(1)?


def example_dnn_forward(x, w1, b1, w2, b2, *, tile_b=None, compute_dtype=None):
    """ExampleDNN forward: sigmoid(relu(x @ w1 + b1) @ w2 + b2).

    x : (B, F).  Pass bf16 x to halve HBM traffic (no wrapper-side cast is
        inserted, so there is no extra HBM pass); post-matmul math is f32.
    w1: (F, 64), b1: (64,), w2: (64, 1), b2: (1,)   ((in, out) layout)
    Returns (B, 1) float32.
    """
    global _SINGLE_BUFFER_OK
    if compute_dtype is not None and x.dtype != jnp.dtype(compute_dtype):
        # Explicit opt-in cast (costs one extra HBM pass over x); prefer to
        # feed bf16 x directly instead.
        x = x.astype(compute_dtype)
    B, F = x.shape
    tb = _pick_tile_b(B, F, x.dtype.itemsize, requested=tile_b)

    if _SINGLE_BUFFER_OK is not False:
        try:
            out = _forward_impl(x, w1, b1, w2, b2, tile_b=tb,
                                single_buffer_weights=True)
            _SINGLE_BUFFER_OK = True
            return out
        except Exception:
            _SINGLE_BUFFER_OK = False
    return _forward_impl(x, w1, b1, w2, b2, tile_b=tb,
                         single_buffer_weights=False)


def init_params(key, num_features, hidden=HIDDEN, out=1):
    """Deterministic init mimicking nn.Linear's uniform(-1/sqrt(fan_in), ...)."""
    k1, k2, k3, k4 = jax.random.split(key, 4)
    bound1 = 1.0 / jnp.sqrt(num_features)
    bound2 = 1.0 / jnp.sqrt(hidden)
    w1 = jax.random.uniform(k1, (num_features, hidden), jnp.float32, -bound1, bound1)
    b1 = jax.random.uniform(k2, (hidden,), jnp.float32, -bound1, bound1)
    w2 = jax.random.uniform(k3, (hidden, out), jnp.float32, -bound2, bound2)
    b2 = jax.random.uniform(k4, (out,), jnp.float32, -bound2, bound2)
    return w1, b1, w2, b2


def _reference(x, w1, b1, w2, b2):
    x = x.astype(jnp.float32)
    return jax.nn.sigmoid(jnp.maximum(x @ w1 + b1, 0.0) @ w2 + b2)


if __name__ == "__main__":
    key = jax.random.PRNGKey(0)
    kx, kp = jax.random.split(key)

    num_features = 32
    w1, b1, w2, b2 = init_params(kp, num_features)

    # --- small batch, f32, single-tile grid ---------------------------------
    x = jax.random.normal(kx, (8, num_features), dtype=jnp.float32)
    out = jax.block_until_ready(example_dnn_forward(x, w1, b1, w2, b2))
    ref = _reference(x, w1, b1, w2, b2)
    assert out.shape == (8, 1)
    # Tolerance allows for MXU default-precision f32 matmul passes.
    assert jnp.allclose(out, ref, atol=5e-3, rtol=5e-3)

    # --- larger batch: multi-tile grid + ragged tail (no jnp.pad path), f32 -
    xb = jax.random.normal(kx, (300, num_features), dtype=jnp.float32)
    outb = jax.block_until_ready(example_dnn_forward(xb, w1, b1, w2, b2))
    refb = _reference(xb, w1, b1, w2, b2)
    assert outb.shape == (300, 1)
    assert jnp.allclose(outb, refb, atol=5e-3, rtol=5e-3)

    # --- bf16 streamed activations supplied by the caller (no extra HBM cast)
    xb16 = xb.astype(jnp.bfloat16)
    out16 = jax.block_until_ready(example_dnn_forward(xb16, w1, b1, w2, b2))
    ref16 = _reference(xb16, w1, b1, w2, b2)
    assert out16.shape == (300, 1)
    assert jnp.allclose(out16, ref16, atol=2e-2, rtol=2e-2)

    print("KERNEL_OK")
</pallas_src>

<mosaic_0001>
module attributes {stable_mosaic.version = 11 : i64} {
  func.func @mlp_kernel(%arg0: i32, %arg1: memref<128x32xf32, #tpu.memory_space<vmem>>, %arg2: memref<32x64xf32, #tpu.memory_space<vmem>>, %arg3: memref<1x64xf32, #tpu.memory_space<vmem>>, %arg4: memref<1x64xf32, #tpu.memory_space<vmem>>, %arg5: memref<1xf32, #tpu.memory_space<smem>>, %arg6: memref<128x1xf32, #tpu.memory_space<vmem>>) attributes {dimension_semantics = [#tpu.dimension_semantics<parallel>], iteration_bounds = array<i64: 1>, scalar_prefetch = 0 : i64, scratch_operands = 0 : i64, tpu.core_type = #tpu.core_type<tc>, window_params = [{transform_indices = @transform_0, window_bounds = array<i64: 128, 32>}, {pipeline_mode = #tpu.pipeline_mode<synchronous>, transform_indices = @transform_1, window_bounds = array<i64: 32, 64>}, {pipeline_mode = #tpu.pipeline_mode<synchronous>, transform_indices = @transform_2, window_bounds = array<i64: 1, 64>}, {pipeline_mode = #tpu.pipeline_mode<synchronous>, transform_indices = @transform_3, window_bounds = array<i64: 1, 64>}, {transform_indices = @transform_4, window_bounds = array<i64: 1>}, {transform_indices = @transform_5, window_bounds = array<i64: 128, 1>}]} {
    %c0 = arith.constant 0 : index
    %c0_0 = arith.constant 0 : index
    %0 = vector.load %arg1[%c0, %c0_0] : memref<128x32xf32, #tpu.memory_space<vmem>>, vector<128x32xf32>
    %c0_1 = arith.constant 0 : index
    %c0_2 = arith.constant 0 : index
    %1 = vector.load %arg2[%c0_1, %c0_2] : memref<32x64xf32, #tpu.memory_space<vmem>>, vector<32x64xf32>
    %cst = arith.constant dense<0.000000e+00> : vector<128x64xf32>
    %2 = tpu.matmul %0, %1, %cst {dimension_numbers = #tpu.dot_dimension_numbers<[1], [0], [0], [1], [0, 0, 1, 1], [], []>} : vector<128x32xf32>, vector<32x64xf32>, vector<128x64xf32> -> vector<128x64xf32>
    %c0_3 = arith.constant 0 : index
    %c0_4 = arith.constant 0 : index
    %3 = vector.load %arg3[%c0_3, %c0_4] : memref<1x64xf32, #tpu.memory_space<vmem>>, vector<1x64xf32>
    %4 = vector.broadcast %3 : vector<1x64xf32> to vector<128x64xf32>
    %5 = arith.addf %2, %4 : vector<128x64xf32>
    %cst_5 = arith.constant 0.000000e+00 : f32
    %6 = vector.broadcast %cst_5 : f32 to vector<128x64xf32>
    %7 = arith.maximumf %5, %6 : vector<128x64xf32>
    %c0_6 = arith.constant 0 : index
    %c0_7 = arith.constant 0 : index
    %8 = vector.load %arg4[%c0_6, %c0_7] : memref<1x64xf32, #tpu.memory_space<vmem>>, vector<1x64xf32>
    %9 = vector.broadcast %8 : vector<1x64xf32> to vector<128x64xf32>
    %10 = arith.mulf %7, %9 : vector<128x64xf32>
    %cst_8 = arith.constant dense<0.000000e+00> : vector<128xf32>
    %11 = vector.multi_reduction <add>, %10, %cst_8 [1] : vector<128x64xf32> to vector<128xf32>
    %12 = vector.shape_cast %11 : vector<128xf32> to vector<128x1xf32>
    %c0_9 = arith.constant 0 : index
    %13 = memref.load %arg5[%c0_9] : memref<1xf32, #tpu.memory_space<smem>>
    %14 = vector.broadcast %13 : f32 to vector<128x1xf32>
    %15 = arith.addf %12, %14 : vector<128x1xf32>
    %cst_10 = arith.constant 0.000000e+00 : f32
    %16 = vector.broadcast %cst_10 : f32 to vector<128x1xf32>
    %17 = arith.subf %16, %15 : vector<128x1xf32>
    %18 = math.exp %17 : vector<128x1xf32>
    %cst_11 = arith.constant 1.000000e+00 : f32
    %19 = vector.broadcast %cst_11 : f32 to vector<128x1xf32>
    %20 = arith.addf %19, %18 : vector<128x1xf32>
    %cst_12 = arith.constant 1.000000e+00 : f32
    %21 = vector.broadcast %cst_12 : f32 to vector<128x1xf32>
    %22 = arith.divf %21, %20 : vector<128x1xf32>
    %c0_13 = arith.constant 0 : index
    %c0_14 = arith.constant 0 : index
    %23 = vector.load %arg6[%c0_13, %c0_14] : memref<128x1xf32, #tpu.memory_space<vmem>>, vector<128x1xf32>
    tpu.vector_store %arg6[%c0_13, %c0_14], %22 {strides = array<i32>} : memref<128x1xf32, #tpu.memory_space<vmem>>, vector<128x1xf32>,
    return
  }
  func.func @transform_0(%arg0: i32) -> (i32, i32) {
    %c0_i32 = arith.constant 0 : i32
    %c0_i32_0 = arith.constant 0 : i32
    return %arg0, %c0_i32 : i32, i32
  }
  func.func @transform_1(%arg0: i32) -> (i32, i32) {
    %c0_i32 = arith.constant 0 : i32
    %c0_i32_0 = arith.constant 0 : i32
    %c0_i32_1 = arith.constant 0 : i32
    return %c0_i32, %c0_i32_0 : i32, i32
  }
  func.func @transform_2(%arg0: i32) -> (i32, i32) {
    %c0_i32 = arith.constant 0 : i32
    %c0_i32_0 = arith.constant 0 : i32
    %c0_i32_1 = arith.constant 0 : i32
    return %c0_i32, %c0_i32_0 : i32, i32
  }
  func.func @transform_3(%arg0: i32) -> (i32, i32) {
    %c0_i32 = arith.constant 0 : i32
    %c0_i32_0 = arith.constant 0 : i32
    %c0_i32_1 = arith.constant 0 : i32
    return %c0_i32, %c0_i32_0 : i32, i32
  }
  func.func @transform_4(%arg0: i32) -> i32 {
    %c0_i32 = arith.constant 0 : i32
    %c0_i32_0 = arith.constant 0 : i32
    return %c0_i32 : i32
  }
  func.func @transform_5(%arg0: i32) -> (i32, i32) {
    %c0_i32 = arith.constant 0 : i32
    %c0_i32_0 = arith.constant 0 : i32
    return %arg0, %c0_i32 : i32, i32
  }
}

module attributes {stable_mosaic.version = 11 : i64} {
  func.func @mlp_kernel(%arg0: i32, %arg1: memref<128x32xf32, #tpu.memory_space<vmem>>, %arg2: memref<32x64xf32, #tpu.memory_space<vmem>>, %arg3: memref<1x64xf32, #tpu.memory_space<vmem>>, %arg4: memref<1x64xf32, #tpu.memory_space<vmem>>, %arg5: memref<1xf32, #tpu.memory_space<smem>>, %arg6: memref<128x1xf32, #tpu.memory_space<vmem>>) attributes {dimension_semantics = [#tpu.dimension_semantics<parallel>], iteration_bounds = array<i64: 1>, scalar_prefetch = 0 : i64, scratch_operands = 0 : i64, tpu.core_type = #tpu.core_type<tc>, window_params = [{transform_indices = @transform_0, window_bounds = array<i64: 128, 32>}, {pipeline_mode = #tpu.pipeline_mode<synchronous>, transform_indices = @transform_1, window_bounds = array<i64: 32, 64>}, {pipeline_mode = #tpu.pipeline_mode<synchronous>, transform_indices = @transform_2, window_bounds = array<i64: 1, 64>}, {pipeline_mode = #tpu.pipeline_mode<synchronous>, transform_indices = @transform_3, window_bounds = array<i64: 1, 64>}, {transform_indices = @transform_4, window_bounds = array<i64: 1>}, {transform_indices = @transform_5, window_bounds = array<i64: 128, 1>}]} {
    %c0 = arith.constant 0 : index
    %c0_0 = arith.constant 0 : index
    %0 = vector.load %arg1[%c0, %c0_0] : memref<128x32xf32, #tpu.memory_space<vmem>>, vector<128x32xf32>
    %c0_1 = arith.constant 0 : index
    %c0_2 = arith.constant 0 : index
    %1 = vector.load %arg2[%c0_1, %c0_2] : memref<32x64xf32, #tpu.memory_space<vmem>>, vector<32x64xf32>
    %cst = arith.constant dense<0.000000e+00> : vector<128x64xf32>
    %2 = tpu.matmul %0, %1, %cst {dimension_numbers = #tpu.dot_dimension_numbers<[1], [0], [0], [1], [0, 0, 1, 1], [], []>} : vector<128x32xf32>, vector<32x64xf32>, vector<128x64xf32> -> vector<128x64xf32>
    %c0_3 = arith.constant 0 : index
    %c0_4 = arith.constant 0 : index
    %3 = vector.load %arg3[%c0_3, %c0_4] : memref<1x64xf32, #tpu.memory_space<vmem>>, vector<1x64xf32>
    %4 = vector.broadcast %3 : vector<1x64xf32> to vector<128x64xf32>
    %5 = arith.addf %2, %4 : vector<128x64xf32>
    %cst_5 = arith.constant 0.000000e+00 : f32
    %6 = vector.broadcast %cst_5 : f32 to vector<128x64xf32>
    %7 = arith.maximumf %5, %6 : vector<128x64xf32>
    %c0_6 = arith.constant 0 : index
    %c0_7 = arith.constant 0 : index
    %8 = vector.load %arg4[%c0_6, %c0_7] : memref<1x64xf32, #tpu.memory_space<vmem>>, vector<1x64xf32>
    %9 = vector.broadcast %8 : vector<1x64xf32> to vector<128x64xf32>
    %10 = arith.mulf %7, %9 : vector<128x64xf32>
    %cst_8 = arith.constant dense<0.000000e+00> : vector<128xf32>
    %11 = vector.multi_reduction <add>, %10, %cst_8 [1] : vector<128x64xf32> to vector<128xf32>
    %12 = vector.shape_cast %11 : vector<128xf32> to vector<128x1xf32>
    %c0_9 = arith.constant 0 : index
    %13 = memref.load %arg5[%c0_9] : memref<1xf32, #tpu.memory_space<smem>>
    %14 = vector.broadcast %13 : f32 to vector<128x1xf32>
    %15 = arith.addf %12, %14 : vector<128x1xf32>
    %cst_10 = arith.constant 0.000000e+00 : f32
    %16 = vector.broadcast %cst_10 : f32 to vector<128x1xf32>
    %17 = arith.subf %16, %15 : vector<128x1xf32>
    %18 = math.exp %17 : vector<128x1xf32>
    %cst_11 = arith.constant 1.000000e+00 : f32
    %19 = vector.broadcast %cst_11 : f32 to vector<128x1xf32>
    %20 = arith.addf %19, %18 : vector<128x1xf32>
    %cst_12 = arith.constant 1.000000e+00 : f32
    %21 = vector.broadcast %cst_12 : f32 to vector<128x1xf32>
    %22 = arith.divf %21, %20 : vector<128x1xf32>
    %c0_13 = arith.constant 0 : index
    %c0_14 = arith.constant 0 : index
    %23 = vector.load %arg6[%c0_13, %c0_14] : memref<128x1xf32, #tpu.memory_space<vmem>>, vector<128x1xf32>
    tpu.vector_store %arg6[%c0_13, %c0_14], %22 {strides = array<i32>} : memref<128x1xf32, #tpu.memory_space<vmem>>, vector<128x1xf32>,
    return
  }
  func.func @transform_0(%arg0: i32) -> (i32, i32) {
    %c0_i32 = arith.constant 0 : i32
    %c0_i32_0 = arith.constant 0 : i32
    return %arg0, %c0_i32 : i32, i32
  }
  func.func @transform_1(%arg0: i32) -> (i32, i32) {
    %c0_i32 = arith.constant 0 : i32
    %c0_i32_0 = arith.constant 0 : i32
    %c0_i32_1 = arith.constant 0 : i32
    return %c0_i32, %c0_i32_0 : i32, i32
  }
  func.func @transform_2(%arg0: i32) -> (i32, i32) {
    %c0_i32 = arith.constant 0 : i32
    %c0_i32_0 = arith.constant 0 : i32
    %c0_i32_1 = arith.constant 0 : i32
    return %c0_i32, %c0_i32_0 : i32, i32
  }
  func.func @transform_3(%arg0: i32) -> (i32, i32) {
    %c0_i32 = arith.constant 0 : i32
    %c0_i32_0 = arith.constant 0 : i32
    %c0_i32_1 = arith.constant 0 : i32
    return %c0_i32, %c0_i32_0 : i32, i32
  }
  func.func @transform_4(%arg0: i32) -> i32 {
    %c0_i32 = arith.constant 0 : i32
    %c0_i32_0 = arith.constant 0 : i32
    return %c0_i32 : i32
  }
  func.func @transform_5(%arg0: i32) -> (i32, i32) {
    %c0_i32 = arith.constant 0 : i32
    %c0_i32_0 = arith.constant 0 : i32
    return %arg0, %c0_i32 : i32, i32
  }
}

</mosaic_0001>

<bundles_post_ra>
// kernel: _forward_impl.1
= control target key start
LH: loop header
LB: loop body
LE: loop exit
PB: predicated region body
PF: predicated region fallthrough
CT: control target
= control target key end

     0   :  { %11 = vsyncpa [#allocation4], 0  ;;  %s689_s18 = smov [#allocation3]   ;;  %s881_s0 = inlined_call_operand.vmem [shape: f32[8,32], index: 0, kind: input, shape index: {}]   ;;  %s882_s1 = inlined_call_operand.hbm [shape: f32[32,64], index: 1, kind: input, shape index: {}]   ;;  %s883_s2 = inlined_call_operand.vmem [shape: f32[1,64], index: 2, kind: input, shape index: {}]   ;;  %s884_s3 = inlined_call_operand.vmem [shape: f32[1,64], index: 3, kind: input, shape index: {}]   ;;  %s885_s4 = inlined_call_operand.<no memory space> [shape: f32[1], index: 4, kind: input, shape index: {}]   ;;  %s886_s5 = inlined_call_operand.vmem [shape: f32[8,1], index: 5, kind: output, shape index: {}]  }
   0x1   :  { %s19_s19 = sshll.u32 %s689_s18, 4  ;;  %s665_s22 = scalar_lea.hbm %s882_s1, 512  ;;  %s20_s19 = int_to_ptr.vmem [resolvable:$true] %s19_s19 }
   0x2   :  { %p666_p0 = scmp.ne.s32.totalorder %s882_s1, %s665_s22  ;;  %p669_p1 = scmp.lt.u32.totalorder %s665_s22, %s882_s1 }
   0x4   :  { %p671_p2 = pnand %p669_p1, %p666_p0 }
   0x6   :  { %674 = shalt.err (!%p671_p2)
}
   0x7   :  { %s675_s27 = scalar_lea.vmem %s20_s19, 512  ;;  %p680_p4 = scmp.lt.s32.totalorder %s20_s19, %s20_s19 }
   0x8   :  { %p676_p3 = scmp.ne.s32.totalorder %s20_s19, %s675_s27  ;;  %p681_p5 = scmp.lt.s32.totalorder %s675_s27, %s675_s27 }
   0xa   :  { %p682_p6 = por %p681_p5, %p680_p4 }
   0xc   :  { %p683_p7 = pnand %p682_p6, %p676_p3 }
   0xe   :  { %686 = shalt.err (!%p683_p7)
}
   0xf   :  { %s690_s28 = smov 128   ;;  %s691_s29 = smov 8  }
  0x10   :  { %25 = dma.hbm_to_vmem [thread:$0]  %s882_s1, 512, %s20_s19, [#allocation4], %s690_s28, %s690_s28, %s691_s29  }
  0x11   :  { %687 = dma.done.wait [#allocation4], 512  }
  0x12   :  { %688 = vsyncadd [#allocation4], 4294966784  ;;  %vm62_vm0 = vcmask 261120   ;;  %v51_v0 = vld [vmem:[#allocation3] sm:$0xff]  ;;  %v52_v1 = vld [vmem:[#allocation3 + $0x8] sm:$0xff]  ;;  %vm295_vm1 = vcmask 523264  }
  0x13   :  { %v53_v2 = vld [vmem:[#allocation3 + $0x10] sm:$0xff]  ;;  %v586_v3 = vpack.c.bf16 %v52_v1, %v51_v0  ;;  %v54_v4 = vld [vmem:[#allocation3 + $0x18] sm:$0xff]  ;;  %v35_v5 = vld [vmem:[%s881_s0] sm:$0xff]  ;;  %vm458_vm2 = vcmask 7168  }
  0x14   :  { %v43_v6 = vld [vmem:[%s881_s0 + $0x40] sm:$0xff]  ;;  %v590_v7 = vpack.c.bf16 %v54_v4, %v53_v2  ;;  %562 = vmatprep.mubr.msk.f32.mxu0 %vm62_vm0, %v35_v5  ;;  %v36_v8 = vld [vmem:[%s881_s0 + $0x8] sm:$0xff]  ;;  %v37_v10 = vld [vmem:[%s881_s0 + $0x10] sm:$0xff] }
  0x15   :  { %574 = vmatprep.mubr.msk.f32.mxu1 %vm62_vm0, %v43_v6  ;;  %587 = vmatprep.subr.bf16.mxu0 %v586_v3  ;;  %v44_v9 = vld [vmem:[%s881_s0 + $0x48] sm:$0xff]  ;;  %v45_v11 = vld [vmem:[%s881_s0 + $0x50] sm:$0xff]  ;;  %v38_v12 = vld [vmem:[%s881_s0 + $0x18] sm:$0xff] }
  0x16   :  { %594 = vmatprep.subr.bf16.mxu1 %v586_v3  ;;  %589 = vmatpush3.bf16.msra.mxu0 %v586_v3  ;;  %v46_v13 = vld [vmem:[%s881_s0 + $0x58] sm:$0xff]  ;;  %v39_v14 = vld [vmem:[%s881_s0 + $0x20] sm:$0xff]  ;;  %v40_v16 = vld [vmem:[%s881_s0 + $0x28] sm:$0xff] }
  0x17   :  { %596 = vmatpush3.bf16.msra.mxu1 %v586_v3  ;;  %591 = vmatprep.subr.bf16.mxu0 %v590_v7  ;;  %v47_v15 = vld [vmem:[%s881_s0 + $0x60] sm:$0xff]  ;;  %v48_v17 = vld [vmem:[%s881_s0 + $0x68] sm:$0xff]  ;;  %v41_v18 = vld [vmem:[%s881_s0 + $0x30] sm:$0xff] }
  0x18   :  { %595 = vmatprep.subr.bf16.mxu1 %v590_v7  ;;  %v49_v19 = vld [vmem:[%s881_s0 + $0x70] sm:$0xff]  ;;  %v42_v20 = vld [vmem:[%s881_s0 + $0x38] sm:$0xff]  ;;  %v801_v22 = vld [vmem:[%s883_s2] ss:$0 sm:$0xff] }
  0x19   :  { %v50_v21 = vld [vmem:[%s881_s0 + $0x78] sm:$0xff]  ;;  %v810_v31 = vld [vmem:[%s884_s3] ss:$0 sm:$0xff] }
  0x1a   :  { %593 = vmatpush3.bf16.msra.mxu0 %v590_v7 }
  0x1b   :  { %597 = vmatpush3.bf16.msra.mxu1 %v590_v7 }
  0x1d   :  { %563 = vmatmul.mubr.msk.f32.vlgmr.msra.gmra.mrb[0].mxu0 %vm62_vm0, %v36_v8 }
  0x1e   :  { %575 = vmatmul.mubr.msk.f32.vlgmr.msra.gmra.mrb[0].mxu1 %vm62_vm0, %v44_v9  ;;  %565 = vmatprep.mubr.msk.f32.mxu0 %vm62_vm0, %v37_v10 }
  0x1f   :  { %577 = vmatprep.mubr.msk.f32.mxu1 %vm62_vm0, %v45_v11 }
  0x21   :  { %566 = vmatmul.mubr.msk.f32.gmra.mrb[2].mxu0 %vm62_vm0, %v38_v12 }
  0x22   :  { %578 = vmatmul.mubr.msk.f32.gmra.mrb[2].mxu1 %vm62_vm0, %v46_v13  ;;  %568 = vmatprep.mubr.msk.f32.mxu0 %vm62_vm0, %v39_v14 }
  0x23   :  { %580 = vmatprep.mubr.msk.f32.mxu1 %vm62_vm0, %v47_v15 }
  0x25   :  { %569 = vmatmul.mubr.msk.f32.gmra.mrb[4].mxu0 %vm62_vm0, %v40_v16 }
  0x26   :  { %581 = vmatmul.mubr.msk.f32.gmra.mrb[4].mxu1 %vm62_vm0, %v48_v17  ;;  %571 = vmatprep.mubr.msk.f32.mxu0 %vm62_vm0, %v41_v18 }
  0x27   :  { %583 = vmatprep.mubr.msk.f32.mxu1 %vm62_vm0, %v49_v19 }
  0x29   :  { %572 = vmatmul.mubr.msk.f32.gmra.mrb[6].mxu0 %vm62_vm0, %v42_v20 }
  0x2a   :  { %584 = vmatmul.mubr.msk.f32.gmra.mrb[6].mxu1 %vm62_vm0, %v50_v21 }
  0xf0   :  { %v564_v23 = vpop.f32.mrb[0].mxu0 }
  0xf1   :  { %v576_v24 = vpop.f32.mrb[0].mxu1  ;;  %v183_v25 = vadd.f32 %v564_v23, %v801_v22  ;;  %v177_v27 = vpop.f32.mrb[1].mxu0 }
  0xf2   :  { %v223_v26 = vadd.f32 %v576_v24, %v801_v22  ;;  %v217_v28 = vpop.f32.mrb[1].mxu1  ;;  %v178_v29 = vadd.f32 %v801_v22, %v177_v27 }
  0xf3   :  { %v218_v30 = vadd.f32 %v801_v22, %v217_v28  ;;  %v257_v32 = vmax.f32 %v183_v25, 0.0 }
  0xf4   :  { %v265_v33 = vmax.f32 %v223_v26, 0.0  ;;  %v256_v34 = vmax.f32 %v178_v29, 0.0  ;;  %v567_v35 = vpop.f32.mrb[2].mxu0 }
  0xf5   :  { %v579_v36 = vpop.f32.mrb[2].mxu1  ;;  %v193_v37 = vadd.f32 %v567_v35, %v801_v22  ;;  %v187_v38 = vpop.f32.mrb[3].mxu0  ;;  %v280_v42 = vmul.f32 %v810_v31, %v257_v32  ;;  %v264_v43 = vmax.f32 %v218_v30, 0.0 }
  0xf6   :  { %v233_v39 = vadd.f32 %v579_v36, %v801_v22  ;;  %v288_v40 = vmul.f32 %v810_v31, %v265_v33  ;;  %v227_v41 = vpop.f32.mrb[3].mxu1  ;;  %v188_v44 = vadd.f32 %v801_v22, %v187_v38  ;;  %v279_v46 = vmul.f32 %v810_v31, %v256_v34 }
  0xf7   :  { %v228_v45 = vadd.f32 %v801_v22, %v227_v41  ;;  %v259_v47 = vmax.f32 %v193_v37, 0.0  ;;  %v299_v50 = vsel %vm295_vm1, %v280_v42, 0.0  ;;  %v287_v59 = vmul.f32 %v810_v31, %v264_v43 }
  0xf8   :  { %v267_v48 = vmax.f32 %v233_v39, 0.0  ;;  %v323_v49 = vsel %vm295_vm1, %v288_v40, 0.0  ;;  %300 = vadd.xlane.f32.xlu0 %v299_v50  ;;  %v570_v51 = vpop.f32.mrb[4].mxu0  ;;  %v258_v60 = vmax.f32 %v188_v44, 0.0  ;;  %v296_v63 = vsel %vm295_vm1, %v279_v46, 0.0 }
  0xf9   :  { %324 = vadd.xlane.f32.xlu1 %v323_v49  ;;  %v582_v52 = vpop.f32.mrb[4].mxu1  ;;  %v282_v53 = vmul.f32 %v810_v31, %v259_v47  ;;  %v203_v54 = vadd.f32 %v570_v51, %v801_v22  ;;  %v197_v55 = vpop.f32.mrb[5].mxu0  ;;  %v266_v61 = vmax.f32 %v228_v45, 0.0  ;;  %v320_v9 = vsel %vm295_vm1, %v287_v59, 0.0 }
  0xfa   :  { %v290_v56 = vmul.f32 %v810_v31, %v267_v48  ;;  %v237_v57 = vpop.f32.mrb[5].mxu1  ;;  %v198_v58 = vadd.f32 %v801_v22, %v197_v55  ;;  %v243_v0 = vadd.f32 %v582_v52, %v801_v22  ;;  %v281_v10 = vmul.f32 %v810_v31, %v258_v60 }
  0xfb   :  { %v305_v62 = vsel %vm295_vm1, %v282_v53, 0.0  ;;  %v238_v1 = vadd.f32 %v801_v22, %v237_v57  ;;  %v261_v4 = vmax.f32 %v203_v54, 0.0  ;;  %v289_v11 = vmul.f32 %v810_v31, %v266_v61 }
  0xfc   :  { %297 = vadd.xlane.f32.xlu0 %v296_v63  ;;  %v573_v2 = vpop.f32.mrb[6].mxu0  ;;  %v260_v5 = vmax.f32 %v198_v58, 0.0  ;;  %v329_v6 = vsel %vm295_vm1, %v290_v56, 0.0  ;;  %v269_v12 = vmax.f32 %v243_v0, 0.0  ;;  %v302_v18 = vsel %vm295_vm1, %v281_v10, 0.0 }
  0xfd   :  { %306 = vadd.xlane.f32.xlu1 %v305_v62  ;;  %v585_v3 = vpop.f32.mrb[6].mxu1  ;;  %v207_v7 = vpop.f32.mrb[7].mxu0  ;;  %v268_v13 = vmax.f32 %v238_v1, 0.0  ;;  %v213_v14 = vadd.f32 %v573_v2, %v801_v22  ;;  %v284_v16 = vmul.f32 %v810_v31, %v261_v4  ;;  %v326_v19 = vsel %vm295_vm1, %v289_v11, 0.0 }
  0xfe   :  { %v247_v8 = vpop.f32.mrb[7].mxu1  ;;  %v208_v15 = vadd.f32 %v801_v22, %v207_v7  ;;  %v283_v17 = vmul.f32 %v810_v31, %v260_v5  ;;  %v253_v20 = vadd.f32 %v585_v3, %v801_v22  ;;  %v292_v23 = vmul.f32 %v810_v31, %v269_v12 }
  0xff   :  { %v248_v21 = vadd.f32 %v801_v22, %v247_v8  ;;  %v291_v24 = vmul.f32 %v810_v31, %v268_v13  ;;  %v263_v25 = vmax.f32 %v213_v14, 0.0  ;;  %v311_v27 = vsel %vm295_vm1, %v284_v16, 0.0 }
 0x100   :  { %321 = vadd.xlane.f32.xlu0 %v320_v9  ;;  %v262_v26 = vmax.f32 %v208_v15, 0.0  ;;  %v308_v28 = vsel %vm295_vm1, %v283_v17, 0.0  ;;  %v271_v29 = vmax.f32 %v253_v20, 0.0  ;;  %v335_v30 = vsel %vm295_vm1, %v292_v23, 0.0 }
 0x101   :  { %330 = vadd.xlane.f32.xlu1 %v329_v6  ;;  %v270_v32 = vmax.f32 %v248_v21, 0.0  ;;  %v332_v33 = vsel %vm295_vm1, %v291_v24, 0.0  ;;  %v286_v22 = vmul.f32 %v810_v31, %v263_v25  ;;  %v859_v41 = vstv %s885_s4 }
 0x102   :  { %v285_v34 = vmul.f32 %v810_v31, %v262_v26  ;;  %v294_v37 = vmul.f32 %v810_v31, %v271_v29 }
 0x103   :  { %v317_v35 = vsel %vm295_vm1, %v286_v22, 0.0  ;;  %v293_v38 = vmul.f32 %v810_v31, %v270_v32 }
 0x104   :  { %327 = vadd.xlane.f32.xlu0 %v326_v19  ;;  %v314_v36 = vsel %vm295_vm1, %v285_v34, 0.0  ;;  %v341_v39 = vsel %vm295_vm1, %v294_v37, 0.0 }
 0x105   :  { %303 = vadd.xlane.f32.xlu1 %v302_v18  ;;  %v338_v40 = vsel %vm295_vm1, %v293_v38, 0.0 }
 0x108   :  { %309 = vadd.xlane.f32.xlu0 %v308_v28 }
 0x109   :  { %312 = vadd.xlane.f32.xlu1 %v311_v27 }
 0x10c   :  { %333 = vadd.xlane.f32.xlu0 %v332_v33 }
 0x10d   :  { %336 = vadd.xlane.f32.xlu1 %v335_v30 }
 0x110   :  { %315 = vadd.xlane.f32.xlu0 %v314_v36 }
 0x111   :  { %318 = vadd.xlane.f32.xlu1 %v317_v35 }
 0x114   :  { %339 = vadd.xlane.f32.xlu0 %v338_v40 }
 0x115   :  { %342 = vadd.xlane.f32.xlu1 %v341_v39 }
 0x185   :  { %v301_v43 = vpop.xlane.xlu0 %300 }
 0x186   :  { %v325_v42 = vpop.xlane.xlu1 %324  ;;  %v347_v45 = vadd.f32 %v859_v41, %v301_v43 }
 0x187   :  { %v355_v44 = vadd.f32 %v859_v41, %v325_v42 }
 0x188   :  { %v363_v46 = vsub.f32 0.0, %v347_v45 }
 0x189   :  { %v371_v31 = vsub.f32 0.0, %v355_v44  ;;  %v298_v48 = vpop.xlane.xlu0 %297 }
 0x18a   :  { %v307_v47 = vpop.xlane.xlu1 %306  ;;  %v380_v50 = vmul.f32 1.442695, %v363_v46  ;;  %v346_v52 = vadd.f32 %v859_v41, %v298_v48 }
 0x18b   :  { %v396_v49 = vmul.f32 1.442695, %v371_v31  ;;  %v349_v51 = vadd.f32 %v859_v41, %v307_v47 }
 0x18c   :  { %v362_v54 = vsub.f32 0.0, %v346_v52 }
 0x18d   :  { %601 = vpow2.f32 %v396_v49  ;;  %v365_v53 = vsub.f32 0.0, %v349_v51  ;;  %v322_v56 = vpop.xlane.xlu0 %321 }
 0x18e   :  { %603 = vpow2.f32 %v380_v50  ;;  %v331_v55 = vpop.xlane.xlu1 %330  ;;  %v378_v58 = vmul.f32 1.442695, %v362_v54  ;;  %v354_v60 = vadd.f32 %v859_v41, %v322_v56 }
 0x18f   :  { %v384_v57 = vmul.f32 1.442695, %v365_v53  ;;  %v357_v59 = vadd.f32 %v859_v41, %v331_v55 }
 0x190   :  { %v370_v62 = vsub.f32 0.0, %v354_v60 }
 0x191   :  { %605 = vpow2.f32 %v384_v57  ;;  %v373_v61 = vsub.f32 0.0, %v357_v59  ;;  %v328_v0 = vpop.xlane.xlu0 %327 }
 0x192   :  { %607 = vpow2.f32 %v378_v58  ;;  %v304_v63 = vpop.xlane.xlu1 %303  ;;  %v394_v2 = vmul.f32 1.442695, %v370_v62  ;;  %v356_v4 = vadd.f32 %v859_v41, %v328_v0 }
 0x193   :  { %v400_v1 = vmul.f32 1.442695, %v373_v61  ;;  %v348_v3 = vadd.f32 %v859_v41, %v304_v63 }
 0x194   :  { %v372_v6 = vsub.f32 0.0, %v356_v4 }
 0x195   :  { %609 = vpow2.f32 %v400_v1  ;;  %v364_v5 = vsub.f32 0.0, %v348_v3  ;;  %v310_v8 = vpop.xlane.xlu0 %309 }
 0x196   :  { %611 = vpow2.f32 %v394_v2  ;;  %v313_v7 = vpop.xlane.xlu1 %312  ;;  %v350_v12 = vadd.f32 %v859_v41, %v310_v8  ;;  %v398_v15 = vmul.f32 1.442695, %v372_v6 }
 0x197   :  { %v602_v9 = vpop.eup %601  ;;  %v382_v10 = vmul.f32 1.442695, %v364_v5  ;;  %v351_v11 = vadd.f32 %v859_v41, %v313_v7 }
 0x198   :  { %v604_v13 = vpop.eup %603  ;;  %v419_v14 = vadd.f32 1.0, %v602_v9  ;;  %v366_v18 = vsub.f32 0.0, %v350_v12 }
 0x199   :  { %v411_v16 = vadd.f32 1.0, %v604_v13  ;;  %613 = vpow2.f32 %v382_v10  ;;  %v367_v17 = vsub.f32 0.0, %v351_v11  ;;  %v334_v20 = vpop.xlane.xlu0 %333 }
 0x19a   :  { %615 = vrcp.f32 %v419_v14  ;;  %v337_v19 = vpop.xlane.xlu1 %336  ;;  %v386_v27 = vmul.f32 1.442695, %v366_v18  ;;  %v358_v28 = vadd.f32 %v859_v41, %v334_v20 }
 0x19b   :  { %v606_v21 = vpop.eup %605  ;;  %617 = vrcp.f32 %v411_v16  ;;  %v388_v23 = vmul.f32 1.442695, %v367_v17  ;;  %v359_v24 = vadd.f32 %v859_v41, %v337_v19 }
 0x19c   :  { %v608_v25 = vpop.eup %607  ;;  %v413_v26 = vadd.f32 1.0, %v606_v21  ;;  %619 = vpow2.f32 %v398_v15  ;;  %v374_v32 = vsub.f32 0.0, %v358_v28 }
 0x19d   :  { %v410_v29 = vadd.f32 1.0, %v608_v25  ;;  %621 = vpow2.f32 %v388_v23  ;;  %v375_v30 = vsub.f32 0.0, %v359_v24  ;;  %v316_v22 = vpop.xlane.xlu0 %315 }
 0x19e   :  { %623 = vrcp.f32 %v413_v26  ;;  %v319_v33 = vpop.xlane.xlu1 %318  ;;  %v352_v37 = vadd.f32 %v859_v41, %v316_v22  ;;  %v402_v40 = vmul.f32 1.442695, %v374_v32 }
 0x19f   :  { %v610_v34 = vpop.eup %609  ;;  %625 = vrcp.f32 %v410_v29  ;;  %v404_v35 = vmul.f32 1.442695, %v375_v30  ;;  %v353_v36 = vadd.f32 %v859_v41, %v319_v33 }
 0x1a0   :  { %v612_v38 = vpop.eup %611  ;;  %v421_v39 = vadd.f32 1.0, %v610_v34  ;;  %627 = vpow2.f32 %v386_v27  ;;  %v368_v44 = vsub.f32 0.0, %v352_v37 }
 0x1a1   :  { %v418_v42 = vadd.f32 1.0, %v612_v38  ;;  %629 = vpow2.f32 %v404_v35  ;;  %v369_v43 = vsub.f32 0.0, %v353_v36  ;;  %v340_v31 = vpop.xlane.xlu0 %339 }
 0x1a2   :  { %631 = vrcp.f32 %v421_v39  ;;  %v343_v45 = vpop.xlane.xlu1 %342  ;;  %v390_v48 = vmul.f32 1.442695, %v368_v44  ;;  %v360_v52 = vadd.f32 %v859_v41, %v340_v31 }
 0x1a3   :  { %v614_v46 = vpop.eup %613  ;;  %633 = vrcp.f32 %v418_v42  ;;  %v392_v47 = vmul.f32 1.442695, %v369_v43  ;;  %v361_v49 = vadd.f32 %v859_v41, %v343_v45 }
 0x1a4   :  { %v616_v50 = vpop.eup %615  ;;  %v412_v51 = vadd.f32 1.0, %v614_v46  ;;  %635 = vpow2.f32 %v402_v40  ;;  %v376_v56 = vsub.f32 0.0, %v360_v52 }
 0x1a5   :  { %v618_v53 = vpop.eup %617  ;;  %637 = vpow2.f32 %v392_v47  ;;  %v377_v54 = vsub.f32 0.0, %v361_v49 }
 0x1a6   :  { %v620_v55 = vpop.eup %619  ;;  %639 = vrcp.f32 %v412_v51  ;;  %v406_v62 = vmul.f32 1.442695, %v376_v56 }
 0x1a7   :  { %v622_v57 = vpop.eup %621  ;;  %v420_v58 = vadd.f32 1.0, %v620_v55  ;;  %641 = vpow2.f32 %v390_v48  ;;  %v408_v59 = vmul.f32 1.442695, %v377_v54 }
 0x1a8   :  { %v624_v60 = vpop.eup %623  ;;  %v415_v61 = vadd.f32 1.0, %v622_v57 }
 0x1a9   :  { %v626_v63 = vpop.eup %625  ;;  %643 = vrcp.f32 %v420_v58 }
 0x1aa   :  { %v628_v0 = vpop.eup %627  ;;  %459 = vst.msk [vmem:[#allocation5] sm:$0xff] %vm458_vm2, %v626_v63  ;;  %645 = vrcp.f32 %v415_v61 }
 0x1ab   :  { %v630_v41 = vpop.eup %629  ;;  %v414_v1 = vadd.f32 1.0, %v628_v0  ;;  %647 = vpow2.f32 %v408_v59 }
 0x1ac   :  { %v632_v2 = vpop.eup %631  ;;  %v423_v3 = vadd.f32 1.0, %v630_v41  ;;  %649 = vpow2.f32 %v406_v62 }
 0x1ad   :  { %v634_v4 = vpop.eup %633  ;;  %651 = vrcp.f32 %v414_v1 }
 0x1ae   :  { %v636_v5 = vpop.eup %635  ;;  %653 = vrcp.f32 %v423_v3 }
 0x1af   :  { %v638_v6 = vpop.eup %637  ;;  %v422_v7 = vadd.f32 1.0, %v636_v5 }
 0x1b0   :  { %v640_v8 = vpop.eup %639  ;;  %v417_v9 = vadd.f32 1.0, %v638_v6 }
 0x1b1   :  { %v642_v10 = vpop.eup %641  ;;  %v504_v11 = vld [vmem:[#allocation5] sm:$0xff]  ;;  %655 = vrcp.f32 %v422_v7 }
 0x1b2   :  { %505 = vst [vmem:[%s886_s5] sm:$0xff] %v504_v11  ;;  %657 = vrcp.f32 %v417_v9  ;;  %v416_v12 = vadd.f32 1.0, %v642_v10 }
 0x1b3   :  { %v644_v13 = vpop.eup %643 }
 0x1b4   :  { %v646_v14 = vpop.eup %645  ;;  %659 = vrcp.f32 %v416_v12 }
 0x1b5   :  { %v648_v15 = vpop.eup %647 }
 0x1b6   :  { %v650_v16 = vpop.eup %649  ;;  %v425_v17 = vadd.f32 1.0, %v648_v15 }
 0x1b7   :  { %v652_v18 = vpop.eup %651  ;;  %v424_v19 = vadd.f32 1.0, %v650_v16 }
 0x1b8   :  { %v654_v20 = vpop.eup %653  ;;  %661 = vrcp.f32 %v425_v17 }
 0x1b9   :  { %663 = vrcp.f32 %v424_v19 }
 0x1bb   :  { %v656_v21 = vpop.eup %655 }
 0x1bc   :  { %v658_v23 = vpop.eup %657 }
 0x1be   :  { %v660_v24 = vpop.eup %659 }
 0x1c2   :  { %v662_v25 = vpop.eup %661 }
 0x1c3   :  { %v664_v26 = vpop.eup %663 }
 0x1c4   :  { %511 = vsyncpa [#allocation4], 1 }

// kernel: _forward_impl.1
= control target key start
LH: loop header
LB: loop body
LE: loop exit
PB: predicated region body
PF: predicated region fallthrough
CT: control target
= control target key end

     0   :  { %11 = vsyncpa [#allocation4], 0  ;;  %s689_s18 = smov [#allocation3]   ;;  %s881_s0 = inlined_call_operand.vmem [shape: f32[8,32], index: 0, kind: input, shape index: {}]   ;;  %s882_s1 = inlined_call_operand.hbm [shape: f32[32,64], index: 1, kind: input, shape index: {}]   ;;  %s883_s2 = inlined_call_operand.vmem [shape: f32[1,64], index: 2, kind: input, shape index: {}]   ;;  %s884_s3 = inlined_call_operand.vmem [shape: f32[1,64], index: 3, kind: input, shape index: {}]   ;;  %s885_s4 = inlined_call_operand.<no memory space> [shape: f32[1], index: 4, kind: input, shape index: {}]   ;;  %s886_s5 = inlined_call_operand.vmem [shape: f32[8,1], index: 5, kind: output, shape index: {}]  }
   0x1   :  { %s19_s19 = sshll.u32 %s689_s18, 4  ;;  %s665_s22 = scalar_lea.hbm %s882_s1, 512  ;;  %s20_s19 = int_to_ptr.vmem [resolvable:$true] %s19_s19 }
   0x2   :  { %p666_p0 = scmp.ne.s32.totalorder %s882_s1, %s665_s22  ;;  %p669_p1 = scmp.lt.u32.totalorder %s665_s22, %s882_s1 }
   0x4   :  { %p671_p2 = pnand %p669_p1, %p666_p0 }
   0x6   :  { %674 = shalt.err (!%p671_p2)
}
   0x7   :  { %s675_s27 = scalar_lea.vmem %s20_s19, 512  ;;  %p680_p4 = scmp.lt.s32.totalorder %s20_s19, %s20_s19 }
   0x8   :  { %p676_p3 = scmp.ne.s32.totalorder %s20_s19, %s675_s27  ;;  %p681_p5 = scmp.lt.s32.totalorder %s675_s27, %s675_s27 }
   0xa   :  { %p682_p6 = por %p681_p5, %p680_p4 }
   0xc   :  { %p683_p7 = pnand %p682_p6, %p676_p3 }
   0xe   :  { %686 = shalt.err (!%p683_p7)
}
   0xf   :  { %s690_s28 = smov 128   ;;  %s691_s29 = smov 8  }
  0x10   :  { %25 = dma.hbm_to_vmem [thread:$0]  %s882_s1, 512, %s20_s19, [#allocation4], %s690_s28, %s690_s28, %s691_s29  }
  0x11   :  { %687 = dma.done.wait [#allocation4], 512  }
  0x12   :  { %688 = vsyncadd [#allocation4], 4294966784  ;;  %vm62_vm0 = vcmask 261120   ;;  %v51_v0 = vld [vmem:[#allocation3] sm:$0xff]  ;;  %v52_v1 = vld [vmem:[#allocation3 + $0x8] sm:$0xff]  ;;  %vm295_vm1 = vcmask 523264  }
  0x13   :  { %v53_v2 = vld [vmem:[#allocation3 + $0x10] sm:$0xff]  ;;  %v586_v3 = vpack.c.bf16 %v52_v1, %v51_v0  ;;  %v54_v4 = vld [vmem:[#allocation3 + $0x18] sm:$0xff]  ;;  %v35_v5 = vld [vmem:[%s881_s0] sm:$0xff]  ;;  %vm458_vm2 = vcmask 7168  }
  0x14   :  { %v43_v6 = vld [vmem:[%s881_s0 + $0x40] sm:$0xff]  ;;  %v590_v7 = vpack.c.bf16 %v54_v4, %v53_v2  ;;  %562 = vmatprep.mubr.msk.f32.mxu0 %vm62_vm0, %v35_v5  ;;  %v36_v8 = vld [vmem:[%s881_s0 + $0x8] sm:$0xff]  ;;  %v37_v10 = vld [vmem:[%s881_s0 + $0x10] sm:$0xff] }
  0x15   :  { %574 = vmatprep.mubr.msk.f32.mxu1 %vm62_vm0, %v43_v6  ;;  %587 = vmatprep.subr.bf16.mxu0 %v586_v3  ;;  %v44_v9 = vld [vmem:[%s881_s0 + $0x48] sm:$0xff]  ;;  %v45_v11 = vld [vmem:[%s881_s0 + $0x50] sm:$0xff]  ;;  %v38_v12 = vld [vmem:[%s881_s0 + $0x18] sm:$0xff] }
  0x16   :  { %594 = vmatprep.subr.bf16.mxu1 %v586_v3  ;;  %589 = vmatpush3.bf16.msra.mxu0 %v586_v3  ;;  %v46_v13 = vld [vmem:[%s881_s0 + $0x58] sm:$0xff]  ;;  %v39_v14 = vld [vmem:[%s881_s0 + $0x20] sm:$0xff]  ;;  %v40_v16 = vld [vmem:[%s881_s0 + $0x28] sm:$0xff] }
  0x17   :  { %596 = vmatpush3.bf16.msra.mxu1 %v586_v3  ;;  %591 = vmatprep.subr.bf16.mxu0 %v590_v7  ;;  %v47_v15 = vld [vmem:[%s881_s0 + $0x60] sm:$0xff]  ;;  %v48_v17 = vld [vmem:[%s881_s0 + $0x68] sm:$0xff]  ;;  %v41_v18 = vld [vmem:[%s881_s0 + $0x30] sm:$0xff] }
  0x18   :  { %595 = vmatprep.subr.bf16.mxu1 %v590_v7  ;;  %v49_v19 = vld [vmem:[%s881_s0 + $0x70] sm:$0xff]  ;;  %v42_v20 = vld [vmem:[%s881_s0 + $0x38] sm:$0xff]  ;;  %v801_v22 = vld [vmem:[%s883_s2] ss:$0 sm:$0xff] }
  0x19   :  { %v50_v21 = vld [vmem:[%s881_s0 + $0x78] sm:$0xff]  ;;  %v810_v31 = vld [vmem:[%s884_s3] ss:$0 sm:$0xff] }
  0x1a   :  { %593 = vmatpush3.bf16.msra.mxu0 %v590_v7 }
  0x1b   :  { %597 = vmatpush3.bf16.msra.mxu1 %v590_v7 }
  0x1d   :  { %563 = vmatmul.mubr.msk.f32.vlgmr.msra.gmra.mrb[0].mxu0 %vm62_vm0, %v36_v8 }
  0x1e   :  { %575 = vmatmul.mubr.msk.f32.vlgmr.msra.gmra.mrb[0].mxu1 %vm62_vm0, %v44_v9  ;;  %565 = vmatprep.mubr.msk.f32.mxu0 %vm62_vm0, %v37_v10 }
  0x1f   :  { %577 = vmatprep.mubr.msk.f32.mxu1 %vm62_vm0, %v45_v11 }
  0x21   :  { %566 = vmatmul.mubr.msk.f32.gmra.mrb[2].mxu0 %vm62_vm0, %v38_v12 }
  0x22   :  { %578 = vmatmul.mubr.msk.f32.gmra.mrb[2].mxu1 %vm62_vm0, %v46_v13  ;;  %568 = vmatprep.mubr.msk.f32.mxu0 %vm62_vm0, %v39_v14 }
  0x23   :  { %580 = vmatprep.mubr.msk.f32.mxu1 %vm62_vm0, %v47_v15 }
  0x25   :  { %569 = vmatmul.mubr.msk.f32.gmra.mrb[4].mxu0 %vm62_vm0, %v40_v16 }
  0x26   :  { %581 = vmatmul.mubr.msk.f32.gmra.mrb[4].mxu1 %vm62_vm0, %v48_v17  ;;  %571 = vmatprep.mubr.msk.f32.mxu0 %vm62_vm0, %v41_v18 }
  0x27   :  { %583 = vmatprep.mubr.msk.f32.mxu1 %vm62_vm0, %v49_v19 }
  0x29   :  { %572 = vmatmul.mubr.msk.f32.gmra.mrb[6].mxu0 %vm62_vm0, %v42_v20 }
  0x2a   :  { %584 = vmatmul.mubr.msk.f32.gmra.mrb[6].mxu1 %vm62_vm0, %v50_v21 }
  0xf0   :  { %v564_v23 = vpop.f32.mrb[0].mxu0 }
  0xf1   :  { %v576_v24 = vpop.f32.mrb[0].mxu1  ;;  %v183_v25 = vadd.f32 %v564_v23, %v801_v22  ;;  %v177_v27 = vpop.f32.mrb[1].mxu0 }
  0xf2   :  { %v223_v26 = vadd.f32 %v576_v24, %v801_v22  ;;  %v217_v28 = vpop.f32.mrb[1].mxu1  ;;  %v178_v29 = vadd.f32 %v801_v22, %v177_v27 }
  0xf3   :  { %v218_v30 = vadd.f32 %v801_v22, %v217_v28  ;;  %v257_v32 = vmax.f32 %v183_v25, 0.0 }
  0xf4   :  { %v265_v33 = vmax.f32 %v223_v26, 0.0  ;;  %v256_v34 = vmax.f32 %v178_v29, 0.0  ;;  %v567_v35 = vpop.f32.mrb[2].mxu0 }
  0xf5   :  { %v579_v36 = vpop.f32.mrb[2].mxu1  ;;  %v193_v37 = vadd.f32 %v567_v35, %v801_v22  ;;  %v187_v38 = vpop.f32.mrb[3].mxu0  ;;  %v280_v42 = vmul.f32 %v810_v31, %v257_v32  ;;  %v264_v43 = vmax.f32 %v218_v30, 0.0 }
  0xf6   :  { %v233_v39 = vadd.f32 %v579_v36, %v801_v22  ;;  %v288_v40 = vmul.f32 %v810_v31, %v265_v33  ;;  %v227_v41 = vpop.f32.mrb[3].mxu1  ;;  %v188_v44 = vadd.f32 %v801_v22, %v187_v38  ;;  %v279_v46 = vmul.f32 %v810_v31, %v256_v34 }
  0xf7   :  { %v228_v45 = vadd.f32 %v801_v22, %v227_v41  ;;  %v259_v47 = vmax.f32 %v193_v37, 0.0  ;;  %v299_v50 = vsel %vm295_vm1, %v280_v42, 0.0  ;;  %v287_v59 = vmul.f32 %v810_v31, %v264_v43 }
  0xf8   :  { %v267_v48 = vmax.f32 %v233_v39, 0.0  ;;  %v323_v49 = vsel %vm295_vm1, %v288_v40, 0.0  ;;  %300 = vadd.xlane.f32.xlu0 %v299_v50  ;;  %v570_v51 = vpop.f32.mrb[4].mxu0  ;;  %v258_v60 = vmax.f32 %v188_v44, 0.0  ;;  %v296_v63 = vsel %vm295_vm1, %v279_v46, 0.0 }
  0xf9   :  { %324 = vadd.xlane.f32.xlu1 %v323_v49  ;;  %v582_v52 = vpop.f32.mrb[4].mxu1  ;;  %v282_v53 = vmul.f32 %v810_v31, %v259_v47  ;;  %v203_v54 = vadd.f32 %v570_v51, %v801_v22  ;;  %v197_v55 = vpop.f32.mrb[5].mxu0  ;;  %v266_v61 = vmax.f32 %v228_v45, 0.0  ;;  %v320_v9 = vsel %vm295_vm1, %v287_v59, 0.0 }
  0xfa   :  { %v290_v56 = vmul.f32 %v810_v31, %v267_v48  ;;  %v237_v57 = vpop.f32.mrb[5].mxu1  ;;  %v198_v58 = vadd.f32 %v801_v22, %v197_v55  ;;  %v243_v0 = vadd.f32 %v582_v52, %v801_v22  ;;  %v281_v10 = vmul.f32 %v810_v31, %v258_v60 }
  0xfb   :  { %v305_v62 = vsel %vm295_vm1, %v282_v53, 0.0  ;;  %v238_v1 = vadd.f32 %v801_v22, %v237_v57  ;;  %v261_v4 = vmax.f32 %v203_v54, 0.0  ;;  %v289_v11 = vmul.f32 %v810_v31, %v266_v61 }
  0xfc   :  { %297 = vadd.xlane.f32.xlu0 %v296_v63  ;;  %v573_v2 = vpop.f32.mrb[6].mxu0  ;;  %v260_v5 = vmax.f32 %v198_v58, 0.0  ;;  %v329_v6 = vsel %vm295_vm1, %v290_v56, 0.0  ;;  %v269_v12 = vmax.f32 %v243_v0, 0.0  ;;  %v302_v18 = vsel %vm295_vm1, %v281_v10, 0.0 }
  0xfd   :  { %306 = vadd.xlane.f32.xlu1 %v305_v62  ;;  %v585_v3 = vpop.f32.mrb[6].mxu1  ;;  %v207_v7 = vpop.f32.mrb[7].mxu0  ;;  %v268_v13 = vmax.f32 %v238_v1, 0.0  ;;  %v213_v14 = vadd.f32 %v573_v2, %v801_v22  ;;  %v284_v16 = vmul.f32 %v810_v31, %v261_v4  ;;  %v326_v19 = vsel %vm295_vm1, %v289_v11, 0.0 }
  0xfe   :  { %v247_v8 = vpop.f32.mrb[7].mxu1  ;;  %v208_v15 = vadd.f32 %v801_v22, %v207_v7  ;;  %v283_v17 = vmul.f32 %v810_v31, %v260_v5  ;;  %v253_v20 = vadd.f32 %v585_v3, %v801_v22  ;;  %v292_v23 = vmul.f32 %v810_v31, %v269_v12 }
  0xff   :  { %v248_v21 = vadd.f32 %v801_v22, %v247_v8  ;;  %v291_v24 = vmul.f32 %v810_v31, %v268_v13  ;;  %v263_v25 = vmax.f32 %v213_v14, 0.0  ;;  %v311_v27 = vsel %vm295_vm1, %v284_v16, 0.0 }
 0x100   :  { %321 = vadd.xlane.f32.xlu0 %v320_v9  ;;  %v262_v26 = vmax.f32 %v208_v15, 0.0  ;;  %v308_v28 = vsel %vm295_vm1, %v283_v17, 0.0  ;;  %v271_v29 = vmax.f32 %v253_v20, 0.0  ;;  %v335_v30 = vsel %vm295_vm1, %v292_v23, 0.0 }
 0x101   :  { %330 = vadd.xlane.f32.xlu1 %v329_v6  ;;  %v270_v32 = vmax.f32 %v248_v21, 0.0  ;;  %v332_v33 = vsel %vm295_vm1, %v291_v24, 0.0  ;;  %v286_v22 = vmul.f32 %v810_v31, %v263_v25  ;;  %v859_v41 = vstv %s885_s4 }
 0x102   :  { %v285_v34 = vmul.f32 %v810_v31, %v262_v26  ;;  %v294_v37 = vmul.f32 %v810_v31, %v271_v29 }
 0x103   :  { %v317_v35 = vsel %vm295_vm1, %v286_v22, 0.0  ;;  %v293_v38 = vmul.f32 %v810_v31, %v270_v32 }
 0x104   :  { %327 = vadd.xlane.f32.xlu0 %v326_v19  ;;  %v314_v36 = vsel %vm295_vm1, %v285_v34, 0.0  ;;  %v341_v39 = vsel %vm295_vm1, %v294_v37, 0.0 }
 0x105   :  { %303 = vadd.xlane.f32.xlu1 %v302_v18  ;;  %v338_v40 = vsel %vm295_vm1, %v293_v38, 0.0 }
 0x108   :  { %309 = vadd.xlane.f32.xlu0 %v308_v28 }
 0x109   :  { %312 = vadd.xlane.f32.xlu1 %v311_v27 }
 0x10c   :  { %333 = vadd.xlane.f32.xlu0 %v332_v33 }
 0x10d   :  { %336 = vadd.xlane.f32.xlu1 %v335_v30 }
 0x110   :  { %315 = vadd.xlane.f32.xlu0 %v314_v36 }
 0x111   :  { %318 = vadd.xlane.f32.xlu1 %v317_v35 }
 0x114   :  { %339 = vadd.xlane.f32.xlu0 %v338_v40 }
 0x115   :  { %342 = vadd.xlane.f32.xlu1 %v341_v39 }
 0x185   :  { %v301_v43 = vpop.xlane.xlu0 %300 }
 0x186   :  { %v325_v42 = vpop.xlane.xlu1 %324  ;;  %v347_v45 = vadd.f32 %v859_v41, %v301_v43 }
 0x187   :  { %v355_v44 = vadd.f32 %v859_v41, %v325_v42 }
 0x188   :  { %v363_v46 = vsub.f32 0.0, %v347_v45 }
 0x189   :  { %v371_v31 = vsub.f32 0.0, %v355_v44  ;;  %v298_v48 = vpop.xlane.xlu0 %297 }
 0x18a   :  { %v307_v47 = vpop.xlane.xlu1 %306  ;;  %v380_v50 = vmul.f32 1.442695, %v363_v46  ;;  %v346_v52 = vadd.f32 %v859_v41, %v298_v48 }
 0x18b   :  { %v396_v49 = vmul.f32 1.442695, %v371_v31  ;;  %v349_v51 = vadd.f32 %v859_v41, %v307_v47 }
 0x18c   :  { %v362_v54 = vsub.f32 0.0, %v346_v52 }
 0x18d   :  { %601 = vpow2.f32 %v396_v49  ;;  %v365_v53 = vsub.f32 0.0, %v349_v51  ;;  %v322_v56 = vpop.xlane.xlu0 %321 }
 0x18e   :  { %603 = vpow2.f32 %v380_v50  ;;  %v331_v55 = vpop.xlane.xlu1 %330  ;;  %v378_v58 = vmul.f32 1.442695, %v362_v54  ;;  %v354_v60 = vadd.f32 %v859_v41, %v322_v56 }
 0x18f   :  { %v384_v57 = vmul.f32 1.442695, %v365_v53  ;;  %v357_v59 = vadd.f32 %v859_v41, %v331_v55 }
 0x190   :  { %v370_v62 = vsub.f32 0.0, %v354_v60 }
 0x191   :  { %605 = vpow2.f32 %v384_v57  ;;  %v373_v61 = vsub.f32 0.0, %v357_v59  ;;  %v328_v0 = vpop.xlane.xlu0 %327 }
 0x192   :  { %607 = vpow2.f32 %v378_v58  ;;  %v304_v63 = vpop.xlane.xlu1 %303  ;;  %v394_v2 = vmul.f32 1.442695, %v370_v62  ;;  %v356_v4 = vadd.f32 %v859_v41, %v328_v0 }
 0x193   :  { %v400_v1 = vmul.f32 1.442695, %v373_v61  ;;  %v348_v3 = vadd.f32 %v859_v41, %v304_v63 }
 0x194   :  { %v372_v6 = vsub.f32 0.0, %v356_v4 }
 0x195   :  { %609 = vpow2.f32 %v400_v1  ;;  %v364_v5 = vsub.f32 0.0, %v348_v3  ;;  %v310_v8 = vpop.xlane.xlu0 %309 }
 0x196   :  { %611 = vpow2.f32 %v394_v2  ;;  %v313_v7 = vpop.xlane.xlu1 %312  ;;  %v350_v12 = vadd.f32 %v859_v41, %v310_v8  ;;  %v398_v15 = vmul.f32 1.442695, %v372_v6 }
 0x197   :  { %v602_v9 = vpop.eup %601  ;;  %v382_v10 = vmul.f32 1.442695, %v364_v5  ;;  %v351_v11 = vadd.f32 %v859_v41, %v313_v7 }
 0x198   :  { %v604_v13 = vpop.eup %603  ;;  %v419_v14 = vadd.f32 1.0, %v602_v9  ;;  %v366_v18 = vsub.f32 0.0, %v350_v12 }
 0x199   :  { %v411_v16 = vadd.f32 1.0, %v604_v13  ;;  %613 = vpow2.f32 %v382_v10  ;;  %v367_v17 = vsub.f32 0.0, %v351_v11  ;;  %v334_v20 = vpop.xlane.xlu0 %333 }
 0x19a   :  { %615 = vrcp.f32 %v419_v14  ;;  %v337_v19 = vpop.xlane.xlu1 %336  ;;  %v386_v27 = vmul.f32 1.442695, %v366_v18  ;;  %v358_v28 = vadd.f32 %v859_v41, %v334_v20 }
 0x19b   :  { %v606_v21 = vpop.eup %605  ;;  %617 = vrcp.f32 %v411_v16  ;;  %v388_v23 = vmul.f32 1.442695, %v367_v17  ;;  %v359_v24 = vadd.f32 %v859_v41, %v337_v19 }
 0x19c   :  { %v608_v25 = vpop.eup %607  ;;  %v413_v26 = vadd.f32 1.0, %v606_v21  ;;  %619 = vpow2.f32 %v398_v15  ;;  %v374_v32 = vsub.f32 0.0, %v358_v28 }
 0x19d   :  { %v410_v29 = vadd.f32 1.0, %v608_v25  ;;  %621 = vpow2.f32 %v388_v23  ;;  %v375_v30 = vsub.f32 0.0, %v359_v24  ;;  %v316_v22 = vpop.xlane.xlu0 %315 }
 0x19e   :  { %623 = vrcp.f32 %v413_v26  ;;  %v319_v33 = vpop.xlane.xlu1 %318  ;;  %v352_v37 = vadd.f32 %v859_v41, %v316_v22  ;;  %v402_v40 = vmul.f32 1.442695, %v374_v32 }
 0x19f   :  { %v610_v34 = vpop.eup %609  ;;  %625 = vrcp.f32 %v410_v29  ;;  %v404_v35 = vmul.f32 1.442695, %v375_v30  ;;  %v353_v36 = vadd.f32 %v859_v41, %v319_v33 }
 0x1a0   :  { %v612_v38 = vpop.eup %611  ;;  %v421_v39 = vadd.f32 1.0, %v610_v34  ;;  %627 = vpow2.f32 %v386_v27  ;;  %v368_v44 = vsub.f32 0.0, %v352_v37 }
 0x1a1   :  { %v418_v42 = vadd.f32 1.0, %v612_v38  ;;  %629 = vpow2.f32 %v404_v35  ;;  %v369_v43 = vsub.f32 0.0, %v353_v36  ;;  %v340_v31 = vpop.xlane.xlu0 %339 }
 0x1a2   :  { %631 = vrcp.f32 %v421_v39  ;;  %v343_v45 = vpop.xlane.xlu1 %342  ;;  %v390_v48 = vmul.f32 1.442695, %v368_v44  ;;  %v360_v52 = vadd.f32 %v859_v41, %v340_v31 }
 0x1a3   :  { %v614_v46 = vpop.eup %613  ;;  %633 = vrcp.f32 %v418_v42  ;;  %v392_v47 = vmul.f32 1.442695, %v369_v43  ;;  %v361_v49 = vadd.f32 %v859_v41, %v343_v45 }
 0x1a4   :  { %v616_v50 = vpop.eup %615  ;;  %v412_v51 = vadd.f32 1.0, %v614_v46  ;;  %635 = vpow2.f32 %v402_v40  ;;  %v376_v56 = vsub.f32 0.0, %v360_v52 }
 0x1a5   :  { %v618_v53 = vpop.eup %617  ;;  %637 = vpow2.f32 %v392_v47  ;;  %v377_v54 = vsub.f32 0.0, %v361_v49 }
 0x1a6   :  { %v620_v55 = vpop.eup %619  ;;  %639 = vrcp.f32 %v412_v51  ;;  %v406_v62 = vmul.f32 1.442695, %v376_v56 }
 0x1a7   :  { %v622_v57 = vpop.eup %621  ;;  %v420_v58 = vadd.f32 1.0, %v620_v55  ;;  %641 = vpow2.f32 %v390_v48  ;;  %v408_v59 = vmul.f32 1.442695, %v377_v54 }
 0x1a8   :  { %v624_v60 = vpop.eup %623  ;;  %v415_v61 = vadd.f32 1.0, %v622_v57 }
 0x1a9   :  { %v626_v63 = vpop.eup %625  ;;  %643 = vrcp.f32 %v420_v58 }
 0x1aa   :  { %v628_v0 = vpop.eup %627  ;;  %459 = vst.msk [vmem:[#allocation5] sm:$0xff] %vm458_vm2, %v626_v63  ;;  %645 = vrcp.f32 %v415_v61 }
 0x1ab   :  { %v630_v41 = vpop.eup %629  ;;  %v414_v1 = vadd.f32 1.0, %v628_v0  ;;  %647 = vpow2.f32 %v408_v59 }
 0x1ac   :  { %v632_v2 = vpop.eup %631  ;;  %v423_v3 = vadd.f32 1.0, %v630_v41  ;;  %649 = vpow2.f32 %v406_v62 }
 0x1ad   :  { %v634_v4 = vpop.eup %633  ;;  %651 = vrcp.f32 %v414_v1 }
 0x1ae   :  { %v636_v5 = vpop.eup %635  ;;  %653 = vrcp.f32 %v423_v3 }
 0x1af   :  { %v638_v6 = vpop.eup %637  ;;  %v422_v7 = vadd.f32 1.0, %v636_v5 }
 0x1b0   :  { %v640_v8 = vpop.eup %639  ;;  %v417_v9 = vadd.f32 1.0, %v638_v6 }
 0x1b1   :  { %v642_v10 = vpop.eup %641  ;;  %v504_v11 = vld [vmem:[#allocation5] sm:$0xff]  ;;  %655 = vrcp.f32 %v422_v7 }
 0x1b2   :  { %505 = vst [vmem:[%s886_s5] sm:$0xff] %v504_v11  ;;  %657 = vrcp.f32 %v417_v9  ;;  %v416_v12 = vadd.f32 1.0, %v642_v10 }
 0x1b3   :  { %v644_v13 = vpop.eup %643 }
 0x1b4   :  { %v646_v14 = vpop.eup %645  ;;  %659 = vrcp.f32 %v416_v12 }
 0x1b5   :  { %v648_v15 = vpop.eup %647 }
 0x1b6   :  { %v650_v16 = vpop.eup %649  ;;  %v425_v17 = vadd.f32 1.0, %v648_v15 }
 0x1b7   :  { %v652_v18 = vpop.eup %651  ;;  %v424_v19 = vadd.f32 1.0, %v650_v16 }
 0x1b8   :  { %v654_v20 = vpop.eup %653  ;;  %661 = vrcp.f32 %v425_v17 }
 0x1b9   :  { %663 = vrcp.f32 %v424_v19 }
 0x1bb   :  { %v656_v21 = vpop.eup %655 }
 0x1bc   :  { %v658_v23 = vpop.eup %657 }
 0x1be   :  { %v660_v24 = vpop.eup %659 }
 0x1c2   :  { %v662_v25 = vpop.eup %661 }
 0x1c3   :  { %v664_v26 = vpop.eup %663 }
 0x1c4   :  { %511 = vsyncpa [#allocation4], 1 }

</bundles_post_ra>
